<compile_context>
chip_gen: v7x
topology: tpu7x:2x2x1
jax: 0.10.0
libtpu: 0.0.40
codegen_flags: <defaults>
</compile_context>

<pallas_src>
import functools

import jax
import jax.numpy as jnp
from jax.experimental import pallas as pl
from jax.experimental.pallas import tpu as pltpu


def _round_up(x, m):
    return ((x + m - 1) // m) * m


# ----------------------------------------------------------------------------
# Host-side helper: fold the 3x3 conv into ONE stacked banded matmul weight
# ----------------------------------------------------------------------------
def _stacked_banded_weight(w_hwio, width, k_pad):
    """(3,3,Cin,Cout) -> (3*k_pad, width*Cout) bf16.

    For each H-tap dh, block rows [dh*k_pad, dh*k_pad + width*Cin) hold
      m[dh, w_in*Cin + c, w_out*Cout + co] = w_hwio[dh, w_in - w_out + 1, c, co]
                                             if |w_in - w_out| <= 1 else 0
    (the W zero-padding folded in); rows [width*Cin, k_pad) are zero (lane padding of
    the activation).  The three dh blocks are stacked along K so that
      [a_dn | act | a_up] @ W_stacked
    is the full 3x3 conv for the lane-dense layout act[(n,h), w*Cin + c]."""
    kh, kw, cin, cout = w_hwio.shape
    assert (kh, kw) == (3, 3)
    w_in = jnp.arange(width)[:, None]
    w_out = jnp.arange(width)[None, :]
    delta = w_in - w_out                                    # (W, W)
    valid = jnp.abs(delta) <= 1
    dw = jnp.clip(delta + 1, 0, 2)                          # (W, W) in {0, 1, 2}
    g = w_hwio[:, dw, :, :]                                 # (3, W, W, Cin, Cout)
    g = jnp.where(valid[None, :, :, None, None], g, 0.0)
    g = jnp.transpose(g, (0, 1, 3, 2, 4))                   # (3, W, Cin, W, Cout)
    g = g.reshape(3, width * cin, width * cout)
    if k_pad > width * cin:
        g = jnp.pad(g, ((0, 0), (0, k_pad - width * cin), (0, 0)))
    return g.reshape(3 * k_pad, width * cout).astype(jnp.bfloat16)


# ----------------------------------------------------------------------------
# Fused Pallas forward: whole extracted layer stack in one kernel
# ----------------------------------------------------------------------------
@functools.partial(jax.jit, static_argnums=(2,))
def _fused_extractor_forward(x_nchw, layer_params, extract_idx):
    """Run a stack of 3x3-conv(+bias+ReLU) layers as ONE fused Pallas kernel and return
    the outputs of the layers in `extract_idx` (NCHW), in that order.

    layer_params: tuple of (w_hwio (3,3,Cin,Cout), bias (Cout,)) for every layer to run.
    extract_idx:  static tuple of layer indices whose outputs are written back to HBM.
    """
    n, c0, h, w = x_nchw.shape
    n_layers = len(layer_params)
    slot = {li: s for s, li in enumerate(extract_idx)}

    # lane width of each layer's input activation (layer 0 padded up to 128)
    lane_in = [_round_up(w * c0, 128)]
    couts = []
    for (w_hwio, _b) in layer_params:
        couts.append(int(w_hwio.shape[-1]))
        lane_in.append(w * couts[-1])

    # ---- tiny XLA-side prep: lane-dense layout + folded bf16 weights ----
    x2d = jnp.transpose(x_nchw, (0, 2, 3, 1)).reshape(n * h, w * c0)   # [(n,h), w*C+c]
    if lane_in[0] > w * c0:
        x2d = jnp.pad(x2d, ((0, 0), (0, lane_in[0] - w * c0)))

    flat_inputs = [x2d]
    for li, (w_hwio, bias) in enumerate(layer_params):
        flat_inputs.append(_stacked_banded_weight(w_hwio, w, lane_in[li]))
        flat_inputs.append(jnp.tile(bias, w).reshape(1, w * couts[li]).astype(jnp.float32))

    # ---- the fused kernel: one image per grid step, everything VMEM-resident ----
    def kernel(*refs):
        x_ref = refs[0]
        wb_refs = refs[1:1 + 2 * n_layers]
        out_refs = refs[1 + 2 * n_layers:]

        # loop-invariant boundary masks for the +/-1 H-shift (zero fill == H padding)
        row = jax.lax.broadcasted_iota(jnp.int32, (h, 1), 0)
        mask_dn = (row != 0).astype(jnp.float32)         # zero where h == 0
        mask_up = (row != h - 1).astype(jnp.float32)     # zero where h == H-1

        act = x_ref[...]                                 # (H, lane_in[0]) f32
        for li in range(n_layers):
            w_ref = wb_refs[2 * li]                      # (3*K, W*Cout) bf16
            b_ref = wb_refs[2 * li + 1]                  # (1, W*Cout)   f32
            # H-taps: XLU sublane roll + VPU boundary mask (no shift matmuls).
            a_dn = (pltpu.roll(act, 1, axis=0) * mask_dn).astype(jnp.bfloat16)
            a_up = (pltpu.roll(act, h - 1, axis=0) * mask_up).astype(jnp.bfloat16)
            taps = jnp.concatenate([a_dn, act.astype(jnp.bfloat16), a_up], axis=1)
            # ONE stacked-K bf16 MXU matmul per layer, f32 accumulation.
            acc = jnp.dot(taps, w_ref[...], preferred_element_type=jnp.float32)
            act = jnp.maximum(acc + b_ref[...], 0.0)     # (H, W*Cout) f32
            if li in slot:                               # only extracted layers -> HBM
                out_refs[slot[li]][...] = act

    in_specs = [pl.BlockSpec((h, lane_in[0]), lambda i: (i, 0))]
    for li in range(n_layers):
        in_specs.append(pl.BlockSpec(flat_inputs[1 + 2 * li].shape, lambda i: (0, 0)))
        in_specs.append(pl.BlockSpec(flat_inputs[2 + 2 * li].shape, lambda i: (0, 0)))
    out_shape = tuple(jax.ShapeDtypeStruct((n * h, w * couts[li]), jnp.float32)
                      for li in extract_idx)
    out_specs = tuple(pl.BlockSpec((h, w * couts[li]), lambda i: (i, 0))
                      for li in extract_idx)

    outs = pl.pallas_call(
        kernel,
        out_shape=out_shape,
        grid_spec=pltpu.PrefetchScalarGridSpec(
            num_scalar_prefetch=0,
            grid=(n,),
            in_specs=in_specs,
            out_specs=out_specs),
        compiler_params=pltpu.CompilerParams(
            dimension_semantics=("parallel",)),
    )(*flat_inputs)
    if not isinstance(outs, (list, tuple)):
        outs = (outs,)

    # lane-dense (NH, W*Cout) -> NCHW (PyTorch hook-output convention)
    results = []
    for s, li in enumerate(extract_idx):
        y = outs[s].reshape(n, h, w, couts[li]).transpose(0, 3, 1, 2)
        results.append(y)
    return tuple(results)


# ----------------------------------------------------------------------------
# Synthetic backbone (stand-in for the torchvision model the aggregator wraps)
# ----------------------------------------------------------------------------
class TinyConvBackbone:
    """conv1 -> layer1 -> layer2 -> layer3, each 3x3 conv (stride 1, pad 1) + ReLU.
    Weights are HWIO; public tensor API is NCHW like PyTorch."""

    layer_order = ("conv1", "layer1", "layer2", "layer3")
    layer_channels = {"conv1": (4, 8), "layer1": (8, 8),
                      "layer2": (8, 16), "layer3": (16, 16)}

    def __init__(self, key):
        self.params = {}
        for i, name in enumerate(self.layer_order):
            cin, cout = self.layer_channels[name]
            kw_, kb = jax.random.split(jax.random.fold_in(key, i))
            self.params[name] = {
                "w": 0.1 * jax.random.normal(kw_, (3, 3, cin, cout), jnp.float32),
                "b": 0.05 * jax.random.normal(kb, (cout,), jnp.float32),
            }


# ----------------------------------------------------------------------------
# NetworkFeatureAggregator equivalent
# ----------------------------------------------------------------------------
class NetworkFeatureAggregator:
    """Efficient extraction of network features.

    Runs the backbone only up to the last layer in layers_to_extract_from (the PyTorch
    version does this with forward hooks + LastLayerToExtractReachedException) and
    returns {layer_name: output}, outputs in NCHW like PyTorch hook outputs."""

    def __init__(self, backbone, layers_to_extract_from):
        self.backbone = backbone
        self.layers_to_extract_from = list(layers_to_extract_from)
        self.outputs = {}
        order = list(backbone.layer_order)
        last = self.layers_to_extract_from[-1]
        # TODO(synk): PyTorch hook registration / handle bookkeeping and the
        # exception-based early exit have no kernel equivalent; realized here by
        # truncating the fused layer stack at the last layer to extract.
        self._prefix = tuple(order[: order.index(last) + 1])
        self._extract_names = [nm for nm in self._prefix
                               if nm in self.layers_to_extract_from]
        self._extract_idx = tuple(self._prefix.index(nm) for nm in self._extract_names)

    def __call__(self, x_nchw):
        self.outputs = {}
        layer_params = tuple(
            (self.backbone.params[nm]["w"], self.backbone.params[nm]["b"])
            for nm in self._prefix)
        results = _fused_extractor_forward(x_nchw, layer_params, self._extract_idx)
        for nm, y in zip(self._extract_names, results):
            self.outputs[nm] = y
        return self.outputs

    def feature_dimensions(self, input_shape, index=-1):
        _input = jnp.ones([1] + list(input_shape), dtype=jnp.float32)
        _output = self(_input)
        if index != -1:
            return [_output[layer][index].shape[1] for layer in self.layers_to_extract_from]
        return [_output[layer].shape[1] for layer in self.layers_to_extract_from]


# ----------------------------------------------------------------------------
# Reference convs (plain JAX / XLA) for correctness check
# ----------------------------------------------------------------------------
def _ref_conv3x3_relu_f32(x_nhwc, w_hwio, bias):
    y = jax.lax.conv_general_dilated(
        x_nhwc, w_hwio, window_strides=(1, 1), padding="SAME",
        dimension_numbers=("NHWC", "HWIO", "NHWC"))
    return jnp.maximum(y + bias.reshape(1, 1, 1, -1), 0.0)


def _ref_conv3x3_relu_bf16(x_nhwc, w_hwio, bias):
    # Matches the kernel's numerics: bf16 operands, f32 accumulation, f32 bias/ReLU.
    y = jax.lax.conv_general_dilated(
        x_nhwc.astype(jnp.bfloat16), w_hwio.astype(jnp.bfloat16),
        window_strides=(1, 1), padding="SAME",
        dimension_numbers=("NHWC", "HWIO", "NHWC"),
        preferred_element_type=jnp.float32)
    return jnp.maximum(y + bias.reshape(1, 1, 1, -1), 0.0)


if __name__ == "__main__":
    key = jax.random.PRNGKey(0)
    k_bb, k_x = jax.random.split(key)

    backbone = TinyConvBackbone(k_bb)
    layers_to_extract_from = ["layer1", "layer2"]
    aggregator = NetworkFeatureAggregator(backbone, layers_to_extract_from)

    # PyTorch-style NCHW input: batch=2, channels=4, spatial=16x16
    x = jax.random.normal(k_x, (2, 4, 16, 16), jnp.float32)

    outputs = aggregator(x)
    jax.block_until_ready(outputs)

    # sanity: shapes
    assert set(outputs.keys()) == set(layers_to_extract_from)
    assert outputs["layer1"].shape == (2, 8, 16, 16)
    assert outputs["layer2"].shape == (2, 16, 16, 16)

    # correctness: fused Pallas path vs XLA conv references through the stack
    x_nhwc = jnp.transpose(x, (0, 2, 3, 1))
    ref_bf, ref_f32 = x_nhwc, x_nhwc
    ref_bf_by_layer, ref_f32_by_layer = {}, {}
    for name in ("conv1", "layer1", "layer2"):
        p = backbone.params[name]
        ref_bf = _ref_conv3x3_relu_bf16(ref_bf, p["w"], p["b"])
        ref_f32 = _ref_conv3x3_relu_f32(ref_f32, p["w"], p["b"])
        ref_bf_by_layer[name] = ref_bf
        ref_f32_by_layer[name] = ref_f32
    for name in layers_to_extract_from:
        got = outputs[name]
        # structural check (matched bf16-operand / f32-accumulate numerics)
        assert jnp.allclose(got, jnp.transpose(ref_bf_by_layer[name], (0, 3, 1, 2)),
                            rtol=1e-2, atol=1e-2), name
        # semantic check against the full-f32 module forward (bf16 rounding tolerance)
        assert jnp.allclose(got, jnp.transpose(ref_f32_by_layer[name], (0, 3, 1, 2)),
                            rtol=6e-2, atol=6e-2), name

    # feature_dimensions path (batch of 1, like the PyTorch helper)
    dims = aggregator.feature_dimensions([4, 16, 16])
    assert dims == [8, 16]

    print("KERNEL_OK")
</pallas_src>

<mosaic_0001>
module attributes {stable_mosaic.version = 11 : i64} {
  func.func @kernel(%arg0: i32, %arg1: memref<16x128xf32, #tpu.memory_space<vmem>>, %arg2: memref<384x128xbf16, #tpu.memory_space<vmem>>, %arg3: memref<1x128xf32, #tpu.memory_space<vmem>>, %arg4: memref<384x128xbf16, #tpu.memory_space<vmem>>, %arg5: memref<1x128xf32, #tpu.memory_space<vmem>>, %arg6: memref<384x256xbf16, #tpu.memory_space<vmem>>, %arg7: memref<1x256xf32, #tpu.memory_space<vmem>>, %arg8: memref<16x128xf32, #tpu.memory_space<vmem>>, %arg9: memref<16x256xf32, #tpu.memory_space<vmem>>) attributes {dimension_semantics = [#tpu.dimension_semantics<parallel>], iteration_bounds = array<i64: 2>, scalar_prefetch = 0 : i64, scratch_operands = 0 : i64, tpu.core_type = #tpu.core_type<tc>, window_params = [{transform_indices = @transform_0, window_bounds = array<i64: 16, 128>}, {pipeline_mode = #tpu.pipeline_mode<synchronous>, transform_indices = @transform_1, window_bounds = array<i64: 384, 128>}, {pipeline_mode = #tpu.pipeline_mode<synchronous>, transform_indices = @transform_2, window_bounds = array<i64: 1, 128>}, {pipeline_mode = #tpu.pipeline_mode<synchronous>, transform_indices = @transform_3, window_bounds = array<i64: 384, 128>}, {pipeline_mode = #tpu.pipeline_mode<synchronous>, transform_indices = @transform_4, window_bounds = array<i64: 1, 128>}, {pipeline_mode = #tpu.pipeline_mode<synchronous>, transform_indices = @transform_5, window_bounds = array<i64: 384, 256>}, {pipeline_mode = #tpu.pipeline_mode<synchronous>, transform_indices = @transform_6, window_bounds = array<i64: 1, 256>}, {transform_indices = @transform_7, window_bounds = array<i64: 16, 128>}, {transform_indices = @transform_8, window_bounds = array<i64: 16, 256>}]} {
    %0 = tpu.iota {dimensions = array<i32: 0>} : vector<16x1xi32>
    %c0_i32 = arith.constant 0 : i32
    %1 = vector.broadcast %c0_i32 : i32 to vector<16x1xi32>
    %2 = arith.cmpi ne, %0, %1 : vector<16x1xi32>
    %3 = arith.extui %2 : vector<16x1xi1> to vector<16x1xi32>
    %4 = arith.sitofp %3 : vector<16x1xi32> to vector<16x1xf32>
    %c15_i32 = arith.constant 15 : i32
    %5 = vector.broadcast %c15_i32 : i32 to vector<16x1xi32>
    %6 = arith.cmpi ne, %0, %5 : vector<16x1xi32>
    %7 = arith.extui %6 : vector<16x1xi1> to vector<16x1xi32>
    %8 = arith.sitofp %7 : vector<16x1xi32> to vector<16x1xf32>
    %c0 = arith.constant 0 : index
    %c0_0 = arith.constant 0 : index
    %9 = vector.load %arg1[%c0, %c0_0] : memref<16x128xf32, #tpu.memory_space<vmem>>, vector<16x128xf32>
    %c1_i32 = arith.constant 1 : i32
    %10 = tpu.dynamic_rotate %9 by %c1_i32 dim 0 : vector<16x128xf32>, i32 -> vector<16x128xf32>
    %11 = vector.broadcast %4 : vector<16x1xf32> to vector<16x128xf32>
    %12 = arith.mulf %10, %11 : vector<16x128xf32>
    %13 = arith.truncf %12 : vector<16x128xf32> to vector<16x128xbf16>
    %c15_i32_1 = arith.constant 15 : i32
    %14 = tpu.dynamic_rotate %9 by %c15_i32_1 dim 0 : vector<16x128xf32>, i32 -> vector<16x128xf32>
    %15 = vector.broadcast %8 : vector<16x1xf32> to vector<16x128xf32>
    %16 = arith.mulf %14, %15 : vector<16x128xf32>
    %17 = arith.truncf %16 : vector<16x128xf32> to vector<16x128xbf16>
    %18 = arith.truncf %9 : vector<16x128xf32> to vector<16x128xbf16>
    %19 = tpu.concatenate %13, %18, %17 in 1 : vector<16x128xbf16>, vector<16x128xbf16>, vector<16x128xbf16> -> vector<16x384xbf16>
    %c0_2 = arith.constant 0 : index
    %c0_3 = arith.constant 0 : index
    %20 = vector.load %arg2[%c0_2, %c0_3] : memref<384x128xbf16, #tpu.memory_space<vmem>>, vector<384x128xbf16>
    %cst = arith.constant dense<0.000000e+00> : vector<16x128xf32>
    %21 = tpu.matmul %19, %20, %cst {dimension_numbers = #tpu.dot_dimension_numbers<[1], [0], [0], [1], [0, 0, 1, 1], [], []>} : vector<16x384xbf16>, vector<384x128xbf16>, vector<16x128xf32> -> vector<16x128xf32>
    %c0_4 = arith.constant 0 : index
    %c0_5 = arith.constant 0 : index
    %22 = vector.load %arg3[%c0_4, %c0_5] : memref<1x128xf32, #tpu.memory_space<vmem>>, vector<1x128xf32>
    %23 = vector.broadcast %22 : vector<1x128xf32> to vector<16x128xf32>
    %24 = arith.addf %21, %23 : vector<16x128xf32>
    %cst_6 = arith.constant 0.000000e+00 : f32
    %25 = vector.broadcast %cst_6 : f32 to vector<16x128xf32>
    %26 = arith.maximumf %24, %25 : vector<16x128xf32>
    %c1_i32_7 = arith.constant 1 : i32
    %27 = tpu.dynamic_rotate %26 by %c1_i32_7 dim 0 : vector<16x128xf32>, i32 -> vector<16x128xf32>
    %28 = vector.broadcast %4 : vector<16x1xf32> to vector<16x128xf32>
    %29 = arith.mulf %27, %28 : vector<16x128xf32>
    %30 = arith.truncf %29 : vector<16x128xf32> to vector<16x128xbf16>
    %c15_i32_8 = arith.constant 15 : i32
    %31 = tpu.dynamic_rotate %26 by %c15_i32_8 dim 0 : vector<16x128xf32>, i32 -> vector<16x128xf32>
    %32 = vector.broadcast %8 : vector<16x1xf32> to vector<16x128xf32>
    %33 = arith.mulf %31, %32 : vector<16x128xf32>
    %34 = arith.truncf %33 : vector<16x128xf32> to vector<16x128xbf16>
    %35 = arith.truncf %26 : vector<16x128xf32> to vector<16x128xbf16>
    %36 = tpu.concatenate %30, %35, %34 in 1 : vector<16x128xbf16>, vector<16x128xbf16>, vector<16x128xbf16> -> vector<16x384xbf16>
    %c0_9 = arith.constant 0 : index
    %c0_10 = arith.constant 0 : index
    %37 = vector.load %arg4[%c0_9, %c0_10] : memref<384x128xbf16, #tpu.memory_space<vmem>>, vector<384x128xbf16>
    %cst_11 = arith.constant dense<0.000000e+00> : vector<16x128xf32>
    %38 = tpu.matmul %36, %37, %cst_11 {dimension_numbers = #tpu.dot_dimension_numbers<[1], [0], [0], [1], [0, 0, 1, 1], [], []>} : vector<16x384xbf16>, vector<384x128xbf16>, vector<16x128xf32> -> vector<16x128xf32>
    %c0_12 = arith.constant 0 : index
    %c0_13 = arith.constant 0 : index
    %39 = vector.load %arg5[%c0_12, %c0_13] : memref<1x128xf32, #tpu.memory_space<vmem>>, vector<1x128xf32>
    %40 = vector.broadcast %39 : vector<1x128xf32> to vector<16x128xf32>
    %41 = arith.addf %38, %40 : vector<16x128xf32>
    %cst_14 = arith.constant 0.000000e+00 : f32
    %42 = vector.broadcast %cst_14 : f32 to vector<16x128xf32>
    %43 = arith.maximumf %41, %42 : vector<16x128xf32>
    %c0_15 = arith.constant 0 : index
    %c0_16 = arith.constant 0 : index
    %44 = vector.load %arg8[%c0_15, %c0_16] : memref<16x128xf32, #tpu.memory_space<vmem>>, vector<16x128xf32>
    tpu.vector_store %arg8[%c0_15, %c0_16], %43 {strides = array<i32>} : memref<16x128xf32, #tpu.memory_space<vmem>>, vector<16x128xf32>,
    %c1_i32_17 = arith.constant 1 : i32
    %45 = tpu.dynamic_rotate %43 by %c1_i32_17 dim 0 : vector<16x128xf32>, i32 -> vector<16x128xf32>
    %46 = vector.broadcast %4 : vector<16x1xf32> to vector<16x128xf32>
    %47 = arith.mulf %45, %46 : vector<16x128xf32>
    %48 = arith.truncf %47 : vector<16x128xf32> to vector<16x128xbf16>
    %c15_i32_18 = arith.constant 15 : i32
    %49 = tpu.dynamic_rotate %43 by %c15_i32_18 dim 0 : vector<16x128xf32>, i32 -> vector<16x128xf32>
    %50 = vector.broadcast %8 : vector<16x1xf32> to vector<16x128xf32>
    %51 = arith.mulf %49, %50 : vector<16x128xf32>
    %52 = arith.truncf %51 : vector<16x128xf32> to vector<16x128xbf16>
    %53 = arith.truncf %43 : vector<16x128xf32> to vector<16x128xbf16>
    %54 = tpu.concatenate %48, %53, %52 in 1 : vector<16x128xbf16>, vector<16x128xbf16>, vector<16x128xbf16> -> vector<16x384xbf16>
    %c0_19 = arith.constant 0 : index
    %c0_20 = arith.constant 0 : index
    %55 = vector.load %arg6[%c0_19, %c0_20] : memref<384x256xbf16, #tpu.memory_space<vmem>>, vector<384x256xbf16>
    %cst_21 = arith.constant dense<0.000000e+00> : vector<16x256xf32>
    %56 = tpu.matmul %54, %55, %cst_21 {dimension_numbers = #tpu.dot_dimension_numbers<[1], [0], [0], [1], [0, 0, 1, 1], [], []>} : vector<16x384xbf16>, vector<384x256xbf16>, vector<16x256xf32> -> vector<16x256xf32>
    %c0_22 = arith.constant 0 : index
    %c0_23 = arith.constant 0 : index
    %57 = vector.load %arg7[%c0_22, %c0_23] : memref<1x256xf32, #tpu.memory_space<vmem>>, vector<1x256xf32>
    %58 = vector.broadcast %57 : vector<1x256xf32> to vector<16x256xf32>
    %59 = arith.addf %56, %58 : vector<16x256xf32>
    %cst_24 = arith.constant 0.000000e+00 : f32
    %60 = vector.broadcast %cst_24 : f32 to vector<16x256xf32>
    %61 = arith.maximumf %59, %60 : vector<16x256xf32>
    %c0_25 = arith.constant 0 : index
    %c0_26 = arith.constant 0 : index
    %62 = vector.load %arg9[%c0_25, %c0_26] : memref<16x256xf32, #tpu.memory_space<vmem>>, vector<16x256xf32>
    tpu.vector_store %arg9[%c0_25, %c0_26], %61 {strides = array<i32>} : memref<16x256xf32, #tpu.memory_space<vmem>>, vector<16x256xf32>,
    return
  }
  func.func @transform_0(%arg0: i32) -> (i32, i32) {
    %c0_i32 = arith.constant 0 : i32
    %c0_i32_0 = arith.constant 0 : i32
    return %arg0, %c0_i32 : i32, i32
  }
  func.func @transform_1(%arg0: i32) -> (i32, i32) {
    %c0_i32 = arith.constant 0 : i32
    %c0_i32_0 = arith.constant 0 : i32
    %c0_i32_1 = arith.constant 0 : i32
    return %c0_i32, %c0_i32_0 : i32, i32
  }
  func.func @transform_2(%arg0: i32) -> (i32, i32) {
    %c0_i32 = arith.constant 0 : i32
    %c0_i32_0 = arith.constant 0 : i32
    %c0_i32_1 = arith.constant 0 : i32
    return %c0_i32, %c0_i32_0 : i32, i32
  }
  func.func @transform_3(%arg0: i32) -> (i32, i32) {
    %c0_i32 = arith.constant 0 : i32
    %c0_i32_0 = arith.constant 0 : i32
    %c0_i32_1 = arith.constant 0 : i32
    return %c0_i32, %c0_i32_0 : i32, i32
  }
  func.func @transform_4(%arg0: i32) -> (i32, i32) {
    %c0_i32 = arith.constant 0 : i32
    %c0_i32_0 = arith.constant 0 : i32
    %c0_i32_1 = arith.constant 0 : i32
    return %c0_i32, %c0_i32_0 : i32, i32
  }
  func.func @transform_5(%arg0: i32) -> (i32, i32) {
    %c0_i32 = arith.constant 0 : i32
    %c0_i32_0 = arith.constant 0 : i32
    %c0_i32_1 = arith.constant 0 : i32
    return %c0_i32, %c0_i32_0 : i32, i32
  }
  func.func @transform_6(%arg0: i32) -> (i32, i32) {
    %c0_i32 = arith.constant 0 : i32
    %c0_i32_0 = arith.constant 0 : i32
    %c0_i32_1 = arith.constant 0 : i32
    return %c0_i32, %c0_i32_0 : i32, i32
  }
  func.func @transform_7(%arg0: i32) -> (i32, i32) {
    %c0_i32 = arith.constant 0 : i32
    %c0_i32_0 = arith.constant 0 : i32
    return %arg0, %c0_i32 : i32, i32
  }
  func.func @transform_8(%arg0: i32) -> (i32, i32) {
    %c0_i32 = arith.constant 0 : i32
    %c0_i32_0 = arith.constant 0 : i32
    return %arg0, %c0_i32 : i32, i32
  }
}

</mosaic_0001>

<bundles_post_ra>
// kernel: tile.28
= control target key start
LH: loop header
LB: loop body
LE: loop exit
PB: predicated region body
PF: predicated region fallthrough
CT: control target
= control target key end

     0   :  { %s28_s0 = inlined_call_operand.vmem [shape: f32[16], index: 0, kind: input, shape index: {}]   ;;  %s29_s1 = inlined_call_operand.vmem [shape: f32[16,16], index: 1, kind: output, shape index: {}]  }
   0x1   :  { %v4_v0 = vld [vmem:[%s28_s0] ss:$0 sm:$0xff] }
   0x2   :  { %5 = vst [vmem:[%s29_s1] sm:$0xff] %v4_v0  ;;  %8 = vst [vmem:[%s29_s1 + $0x8] sm:$0xff] %v4_v0 }

// kernel: tile.29
= control target key start
LH: loop header
LB: loop body
LE: loop exit
PB: predicated region body
PF: predicated region fallthrough
CT: control target
= control target key end

     0   :  { %s7_s6 = smov 3  ;;  %s21_s9 = smov 3  ;;  %vm4_vm0 = vcmask 130048   ;;  %vm11_vm1 = vcmask 1048448   ;;  %vm18_vm2 = vcmask 917248   ;;  %vm25_vm3 = vcmask 786048   ;;  %s128_s0 = inlined_call_operand.vmem [shape: f32[16,16], index: 0, kind: input, shape index: {}]   ;;  %s129_s1 = inlined_call_operand.vmem [shape: f32[1,256], index: 1, kind: output, shape index: {}]  }
   0x1   :  { %v66_v0 = vld [vmem:[%s128_s0 + $0x7] ss:$8 sm:%s7_s6]   ;;  %s81_s10 = smov 112   ;;  %v68_v1 = vld [vmem:[%s128_s0 + $0x5] ss:$8 sm:%s21_s9]   ;;  %s14_s13 = smov 3 }
   0x2   :  { %9 = vrot.lane.b32.xlu0 %v66_v0, %s81_s10  ;;  %s82_s14 = smov 80   ;;  %v67_v2 = vld [vmem:[%s128_s0 + $0x6] ss:$8 sm:%s14_s13]   ;;  %s28_s17 = smov 3  ;;  %vm32_vm4 = vcmask 654848   ;;  %vm39_vm5 = vcmask 523648  }
   0x3   :  { %23 = vrot.lane.b32.xlu1 %v68_v1, %s82_s14  ;;  %v69_v3 = vld [vmem:[%s128_s0 + $0x4] ss:$8 sm:%s28_s17]   ;;  %s35_s20 = smov 3  ;;  %s42_s21 = smov 3  ;;  %vm46_vm6 = vcmask 392448   ;;  %vm53_vm7 = vcmask 261248  }
   0x4   :  { %s83_s22 = smov 96   ;;  %s84_s23 = smov 64   ;;  %v70_v4 = vld [vmem:[%s128_s0 + $0x3] ss:$8 sm:%s35_s20]   ;;  %v71_v5 = vld [vmem:[%s128_s0 + $0x2] ss:$8 sm:%s42_s21]  }
   0x5   :  { %s2_s26 = smov 3  ;;  %s49_s29 = smov 3 }
   0x6   :  { %16 = vrot.lane.b32.xlu0 %v67_v2, %s83_s22  ;;  %v3_v6 = vld [vmem:[%s128_s0] ss:$8 sm:%s2_s26]   ;;  %s85_s3 = smov 48   ;;  %s86_s4 = smov 32  }
   0x7   :  { %30 = vrot.lane.b32.xlu1 %v69_v3, %s84_s23  ;;  %5 = vst.msk [vmem:[#allocation0] ss:$8 sm:$0x3] %vm4_vm0, %v3_v6   ;;  %v72_v7 = vld [vmem:[%s128_s0 + $0x1] ss:$8 sm:%s49_s29]   ;;  %s87_s0 = smov 16  }
   0xa   :  { %37 = vrot.lane.b32.xlu0 %v70_v4, %s85_s3 }
   0xb   :  { %44 = vrot.lane.b32.xlu1 %v71_v5, %s86_s4 }
   0xe   :  { %51 = vrot.lane.b32.xlu0 %v72_v7, %s87_s0 }
  0x74   :  { %v10_v8 = vpop.permute.xlu0 %9  }
  0x75   :  { %12 = vst.msk [vmem:[#allocation0] ss:$8 sm:$0x3] %vm11_vm1, %v10_v8   ;;  %v24_v9 = vpop.permute.xlu1 %23  }
  0x78   :  { %v17_v10 = vpop.permute.xlu0 %16  }
  0x79   :  { %19 = vst.msk [vmem:[#allocation0] ss:$8 sm:$0x3] %vm18_vm2, %v17_v10   ;;  %v31_v11 = vpop.permute.xlu1 %30  }
  0x7a   :  { %26 = vst.msk [vmem:[#allocation0] ss:$8 sm:$0x3] %vm25_vm3, %v24_v9  }
  0x7b   :  { %33 = vst.msk [vmem:[#allocation0] ss:$8 sm:$0x3] %vm32_vm4, %v31_v11  }
  0x7c   :  { %v38_v12 = vpop.permute.xlu0 %37  }
  0x7d   :  { %40 = vst.msk [vmem:[#allocation0] ss:$8 sm:$0x3] %vm39_vm5, %v38_v12   ;;  %v45_v13 = vpop.permute.xlu1 %44  }
  0x7e   :  { %47 = vst.msk [vmem:[#allocation0] ss:$8 sm:$0x3] %vm46_vm6, %v45_v13  }
  0x80   :  { %v52_v14 = vpop.permute.xlu0 %51  }
  0x81   :  { %54 = vst.msk [vmem:[#allocation0] ss:$8 sm:$0x3] %vm53_vm7, %v52_v14  }
  0x88   :  { %v58_v15 = vld [vmem:[#allocation0] sm:$0x1]  ;;  %v62_v16 = vld [vmem:[#allocation0 + $0x8] sm:$0x1] }
  0x89   :  { %60 = vst [vmem:[%s129_s1] sm:$0x1] %v58_v15  ;;  %73 = vst [vmem:[%s129_s1 + $0x1] sm:$0x1] %v62_v16 }

// kernel: tile.18
= control target key start
LH: loop header
LB: loop body
LE: loop exit
PB: predicated region body
PF: predicated region fallthrough
CT: control target
= control target key end

     0   :  { %s28_s0 = inlined_call_operand.vmem [shape: f32[8], index: 0, kind: input, shape index: {}]   ;;  %s29_s1 = inlined_call_operand.vmem [shape: f32[16,8], index: 1, kind: output, shape index: {}]  }
   0x1   :  { %v4_v0 = vld [vmem:[%s28_s0] ss:$0 sm:$0xff] }
   0x2   :  { %5 = vst [vmem:[%s29_s1] sm:$0xff] %v4_v0  ;;  %8 = vst [vmem:[%s29_s1 + $0x8] sm:$0xff] %v4_v0 }

// kernel: tile.19
= control target key start
LH: loop header
LB: loop body
LE: loop exit
PB: predicated region body
PF: predicated region fallthrough
CT: control target
= control target key end

     0   :  { %s131_s10 = smov 120   ;;  %s132_s11 = smov 104   ;;  %vm3_vm0 = vcmask 64512   ;;  %vm9_vm1 = vcmask 1048512   ;;  %vm15_vm2 = vcmask 982912   ;;  %vm21_vm3 = vcmask 917312   ;;  %s207_s0 = inlined_call_operand.vmem [shape: f32[16,8], index: 0, kind: input, shape index: {}]   ;;  %s208_s1 = inlined_call_operand.vmem [shape: f32[1,128], index: 1, kind: output, shape index: {}]  }
   0x1   :  { %v101_v0 = vld [vmem:[%s207_s0 + $0xf] sm:$0x1]   ;;  %v103_v1 = vld [vmem:[%s207_s0 + $0xd] sm:$0x1]   ;;  %v102_v2 = vld [vmem:[%s207_s0 + $0xe] sm:$0x1]  }
   0x2   :  { %7 = vrot.lane.b32.xlu0 %v101_v0, %s131_s10  ;;  %19 = vrot.lane.b32.xlu1 %v103_v1, %s132_s11  ;;  %v104_v3 = vld [vmem:[%s207_s0 + $0xc] sm:$0x1]   ;;  %s133_s16 = smov 112   ;;  %s134_s17 = smov 96   ;;  %v105_v4 = vld [vmem:[%s207_s0 + $0xb] sm:$0x1]  }
   0x3   :  { %v106_v5 = vld [vmem:[%s207_s0 + $0xa] sm:$0x1]   ;;  %v2_v6 = vld [vmem:[%s207_s0] sm:$0x1]   ;;  %s135_s24 = smov 88   ;;  %s136_s25 = smov 80  }
   0x4   :  { %4 = vst.msk [vmem:[#allocation0] sm:$0x1] %vm3_vm0, %v2_v6   ;;  %v107_v7 = vld [vmem:[%s207_s0 + $0x9] sm:$0x1]   ;;  %v108_v8 = vld [vmem:[%s207_s0 + $0x8] sm:$0x1]  }
   0x5   :  { %s137_s30 = smov 72   ;;  %s138_s2 = smov 64   ;;  %v109_v9 = vld [vmem:[%s207_s0 + $0x7] sm:$0x1]   ;;  %v110_v10 = vld [vmem:[%s207_s0 + $0x6] sm:$0x1]  }
   0x6   :  { %13 = vrot.lane.b32.xlu0 %v102_v2, %s133_s16  ;;  %25 = vrot.lane.b32.xlu1 %v104_v3, %s134_s17  ;;  %s139_s7 = smov 56   ;;  %s140_s8 = smov 48   ;;  %v111_v11 = vld [vmem:[%s207_s0 + $0x5] sm:$0x1]   ;;  %v112_v12 = vld [vmem:[%s207_s0 + $0x4] sm:$0x1]  }
   0x7   :  { %s141_s13 = smov 40   ;;  %s142_s14 = smov 32   ;;  %v113_v13 = vld [vmem:[%s207_s0 + $0x3] sm:$0x1]   ;;  %v114_v14 = vld [vmem:[%s207_s0 + $0x2] sm:$0x1]  }
   0x8   :  { %s143_s19 = smov 24   ;;  %s144_s20 = smov 16   ;;  %v115_v15 = vld [vmem:[%s207_s0 + $0x1] sm:$0x1]   ;;  %vm27_vm4 = vcmask 851712   ;;  %vm33_vm5 = vcmask 786112  }
   0x9   :  { %s145_s0 = smov 8   ;;  %vm39_vm6 = vcmask 720512   ;;  %vm45_vm7 = vcmask 654912   ;;  %vm51_vm8 = vcmask 589312   ;;  %vm57_vm9 = vcmask 523712  }
   0xa   :  { %31 = vrot.lane.b32.xlu0 %v105_v4, %s135_s24  ;;  %37 = vrot.lane.b32.xlu1 %v106_v5, %s136_s25  ;;  %vm63_vm10 = vcmask 458112   ;;  %vm69_vm11 = vcmask 392512   ;;  %vm75_vm12 = vcmask 326912   ;;  %vm81_vm13 = vcmask 261312  }
   0xb   :  { %vm87_vm14 = vcmask 195712   ;;  %vm93_vm15 = vcmask 130112  }
   0xe   :  { %43 = vrot.lane.b32.xlu0 %v107_v7, %s137_s30  ;;  %49 = vrot.lane.b32.xlu1 %v108_v8, %s138_s2 }
  0x12   :  { %55 = vrot.lane.b32.xlu0 %v109_v9, %s139_s7  ;;  %61 = vrot.lane.b32.xlu1 %v110_v10, %s140_s8 }
  0x16   :  { %67 = vrot.lane.b32.xlu0 %v111_v11, %s141_s13  ;;  %73 = vrot.lane.b32.xlu1 %v112_v12, %s142_s14 }
  0x1a   :  { %79 = vrot.lane.b32.xlu0 %v113_v13, %s143_s19  ;;  %85 = vrot.lane.b32.xlu1 %v114_v14, %s144_s20 }
  0x1e   :  { %91 = vrot.lane.b32.xlu0 %v115_v15, %s145_s0 }
  0x74   :  { %v8_v16 = vpop.permute.xlu0 %7   ;;  %v20_v17 = vpop.permute.xlu1 %19  }
  0x75   :  { %10 = vst.msk [vmem:[#allocation0] sm:$0x1] %vm9_vm1, %v8_v16  }
  0x78   :  { %v14_v18 = vpop.permute.xlu0 %13   ;;  %v26_v19 = vpop.permute.xlu1 %25  }
  0x79   :  { %16 = vst.msk [vmem:[#allocation0] sm:$0x1] %vm15_vm2, %v14_v18  }
  0x7a   :  { %22 = vst.msk [vmem:[#allocation0] sm:$0x1] %vm21_vm3, %v20_v17  }
  0x7b   :  { %28 = vst.msk [vmem:[#allocation0] sm:$0x1] %vm27_vm4, %v26_v19  }
  0x7c   :  { %v32_v20 = vpop.permute.xlu0 %31   ;;  %v38_v21 = vpop.permute.xlu1 %37  }
  0x7d   :  { %34 = vst.msk [vmem:[#allocation0] sm:$0x1] %vm33_vm5, %v32_v20  }
  0x7e   :  { %40 = vst.msk [vmem:[#allocation0] sm:$0x1] %vm39_vm6, %v38_v21  }
  0x80   :  { %v44_v22 = vpop.permute.xlu0 %43   ;;  %v50_v23 = vpop.permute.xlu1 %49  }
  0x81   :  { %46 = vst.msk [vmem:[#allocation0] sm:$0x1] %vm45_vm7, %v44_v22  }
  0x82   :  { %52 = vst.msk [vmem:[#allocation0] sm:$0x1] %vm51_vm8, %v50_v23  }
  0x84   :  { %v56_v24 = vpop.permute.xlu0 %55   ;;  %v62_v25 = vpop.permute.xlu1 %61  }
  0x85   :  { %58 = vst.msk [vmem:[#allocation0] sm:$0x1] %vm57_vm9, %v56_v24  }
  0x86   :  { %64 = vst.msk [vmem:[#allocation0] sm:$0x1] %vm63_vm10, %v62_v25  }
  0x88   :  { %v68_v26 = vpop.permute.xlu0 %67   ;;  %v74_v27 = vpop.permute.xlu1 %73  }
  0x89   :  { %70 = vst.msk [vmem:[#allocation0] sm:$0x1] %vm69_vm11, %v68_v26  }
  0x8a   :  { %76 = vst.msk [vmem:[#allocation0] sm:$0x1] %vm75_vm12, %v74_v27  }
  0x8c   :  { %v80_v28 = vpop.permute.xlu0 %79   ;;  %v86_v29 = vpop.permute.xlu1 %85  }
  0x8d   :  { %82 = vst.msk [vmem:[#allocation0] sm:$0x1] %vm81_vm13, %v80_v28  }
  0x8e   :  { %88 = vst.msk [vmem:[#allocation0] sm:$0x1] %vm87_vm14, %v86_v29  }
  0x90   :  { %v92_v30 = vpop.permute.xlu0 %91  }
  0x91   :  { %94 = vst.msk [vmem:[#allocation0] sm:$0x1] %vm93_vm15, %v92_v30  }
  0x98   :  { %v98_v31 = vld [vmem:[#allocation0] sm:$0x1] }
  0x99   :  { %100 = vst [vmem:[%s208_s1] sm:$0x1] %v98_v31 }

// kernel: _fused_extractor_forward.1
= control target key start
LH: loop header
LB: loop body
LE: loop exit
PB: predicated region body
PF: predicated region fallthrough
CT: control target
= control target key end

     0   :  { %s1856_s27 = smov 0   ;;  %s2245_s0 = inlined_call_operand.vmem [shape: f32[32,128], index: 0, kind: input, shape index: {}]   ;;  %s2246_s1 = inlined_call_operand.vmem [shape: bf16[384,128], index: 1, kind: input, shape index: {}]   ;;  %s2247_s2 = inlined_call_operand.vmem [shape: f32[1,128], index: 2, kind: input, shape index: {}]   ;;  %s2248_s3 = inlined_call_operand.vmem [shape: bf16[384,128], index: 3, kind: input, shape index: {}]   ;;  %s2249_s4 = inlined_call_operand.vmem [shape: f32[1,128], index: 4, kind: input, shape index: {}]   ;;  %s2250_s5 = inlined_call_operand.vmem [shape: bf16[384,256], index: 5, kind: input, shape index: {}]   ;;  %s2251_s6 = inlined_call_operand.vmem [shape: f32[1,256], index: 6, kind: input, shape index: {}]   ;;  %s2252_s7 = inlined_call_operand.vmem [shape: f32[32,128], index: 7, kind: output, shape index: {0}]   ;;  %s2253_s8 = inlined_call_operand.vmem [shape: f32[32,256], index: 8, kind: output, shape index: {1}]  }
   0x1 LB: > { %s1444_s28 = sadd.s32 4294967295, %s1806_s27   ;;  %p1448_p0 = scmp.ge.s32.totalorder %s1806_s27, 1  ;;  %s1806_s27 = sphi %s1856_s27, %s19_s27  }
   0x2   : > { %p266_p1 = scmp.lt.s32.totalorder %s1806_s27, 3 }
   0x4   : > { %p267_p2 = pnand %p1448_p0, %p266_p1 }
   0x5   : > { %v1680_v0 = vld [vmem:[%s2246_s1 + $0x40] sm:$0xff] (!%p267_p2)   ;;  %s1449_s9 = sshll.u32 (!%p267_p2), %s1444_s28, 1  ;;  %v1682_v2 = vld [vmem:[%s2246_s1 + $0x48] sm:$0xff] (!%p267_p2)   ;;  %v1684_v4 = vld [vmem:[%s2246_s1 + $0x50] sm:$0xff] (!%p267_p2)   ;;  %v326_v7 = vlaneseq (!%p267_p2)  ;;  %v1808_v21 = vmov (!%p267_p2), 0.0   ;;  %vm1809_vm2 = vmmov (!%p267_p2), 0  }
   0x6   : > { %270 = sbr.rel (%p267_p2) target bundleno = 777 (0x309), region = 48  ;;  %v1681_v1 = vld [vmem:[%s2246_s1] sm:$0xff] (!%p267_p2)   ;;  %1559 = vmatprep.subr.bf16.mxu1 (!%p267_p2), %v1680_v0  ;;  %p307_p3 = scmp.lt.s32.totalorder (!%p267_p2), %s1449_s9, 3  ;;  %v1683_v3 = vld [vmem:[%s2246_s1 + $0x8] sm:$0xff] (!%p267_p2)   ;;  %v1685_v5 = vld [vmem:[%s2246_s1 + $0x10] sm:$0xff] (!%p267_p2)  }
   0x7   : > { %1560 = vmatpush3.bf16.msra.mxu1 (!%p267_p2), %v1681_v1  ;;  %v1686_v6 = vld [vmem:[%s2246_s1 + $0x58] sm:$0xff] (!%p267_p2)   ;;  %v1688_v9 = vld [vmem:[%s2246_s1 + $0x60] sm:$0xff] (!%p267_p2)   ;;  %v1899_v10 = vshrl.u32 (!%p267_p2), %v326_v7, 7  ;;  %v1690_v12 = vld [vmem:[%s2246_s1 + $0x68] sm:$0xff] (!%p267_p2)  }
   0x8   : > { %1561 = vmatprep.subr.bf16.mxu1 (!%p267_p2), %v1682_v2  ;;  %v1687_v8 = vld [vmem:[%s2246_s1 + $0x18] sm:$0xff] (!%p267_p2)   ;;  %v1689_v11 = vld [vmem:[%s2246_s1 + $0x20] sm:$0xff] (!%p267_p2)   ;;  %v1691_v15 = vld [vmem:[%s2246_s1 + $0x28] sm:$0xff] (!%p267_p2)  }
   0x9   : > { %vm329_vm0 = vcmp.ne.s32.totalorder (!%p267_p2), %v1899_v10, 0  ;;  %v1692_v19 = vld [vmem:[%s2246_s1 + $0x70] sm:$0xff] (!%p267_p2)   ;;  %vm345_vm1 = vcmp.lt.s32.totalorder (!%p267_p2), %v1899_v10, 1  ;;  %v1694_v24 = vld [vmem:[%s2246_s1 + $0x78] sm:$0xff] (!%p267_p2)   ;;  %v1696_v28 = vld [vmem:[%s2246_s1 + $0x80] sm:$0xff] (!%p267_p2)   ;;  %v328_v34 = vadd.s32 (!%p267_p2), 8, %v1899_v10 }
   0xa   : > { %v1693_v20 = vld [vmem:[%s2246_s1 + $0x30] sm:$0xff] (!%p267_p2)   ;;  %v1919_v22 = vsel (!%p267_p2), %vm329_vm0, 1.0, %v1808_v21  ;;  %v1695_v25 = vld [vmem:[%s2246_s1 + $0x38] sm:$0xff] (!%p267_p2)   ;;  %v1697_v30 = vld [vmem:[%s2246_s1 + $0x88] sm:$0xff] (!%p267_p2)   ;;  %vm353_vm3 = vcmp.lt.s32.totalorder (!%p267_p2), %v1899_v10, 7 }
   0xb   : > { %1562 = vmatpush3.bf16.msra.mxu1 (!%p267_p2), %v1683_v3  ;;  %v1698_v31 = vld [vmem:[%s2246_s1 + $0x90] sm:$0xff] (!%p267_p2)   ;;  %v1699_v32 = vld [vmem:[%s2246_s1 + $0x98] sm:$0xff] (!%p267_p2)   ;;  %v1700_v33 = vld [vmem:[%s2246_s1 + $0xa0] sm:$0xff] (!%p267_p2)   ;;  %vm336_vm4 = vcmp.ne.s32.totalorder (!%p267_p2), %v328_v34, 15 }
   0xc   : > { %1563 = vmatprep.subr.bf16.mxu1 (!%p267_p2), %v1684_v4  ;;  %v1701_v35 = vld [vmem:[%s2246_s1 + $0xa8] sm:$0xff] (!%p267_p2)   ;;  %v1702_v38 = vld [vmem:[%s2246_s1 + $0xb0] sm:$0xff] (!%p267_p2)   ;;  %v1966_v40 = vsel (!%p267_p2), %vm336_vm4, 1.0, %v1808_v21  ;;  %v1703_v42 = vld [vmem:[%s2246_s1 + $0xb8] sm:$0xff] (!%p267_p2)  }
   0xd   : > { %s2255_s9 = smov (!%p307_p3, %s1449_s9), 3  ;;  %v1704_v45 = vld [vmem:[%s2248_s3 + $0x40] sm:$0xff]   ;;  %v1707_v48 = vld [vmem:[%s2248_s3 + $0x48] sm:$0xff]   ;;  %v1710_v51 = vld [vmem:[%s2248_s3 + $0x50] sm:$0xff]  }
   0xe   : > { %s1450_s22 = sshll.u32 %s2255_s9, 3  ;;  %v1705_v46 = vld [vmem:[%s2248_s3] sm:$0xff]   ;;  %1590 = vmatprep.subr.bf16.mxu0 %v1704_v45  ;;  %v1709_v49 = vld [vmem:[%s2248_s3 + $0x88] sm:$0xff]   ;;  %v1712_v52 = vld [vmem:[%s2248_s3 + $0x90] sm:$0xff]   ;;  %s1558_s20 = sshll.u32 %s2255_s9, 4 }
   0xf   : > { %1564 = vmatpush3.bf16.msra.mxu1 %v1685_v5  ;;  %s310_s30 = scalar_lea.vmem %s2245_s0, %s1450_s22  ;;  %v1706_v47 = vld [vmem:[%s2248_s3 + $0x80] sm:$0xff]   ;;  %1591 = vmatpush3.bf16.msra.mxu0 %v1705_v46  ;;  %v1708_v50 = vld [vmem:[%s2248_s3 + $0x8] sm:$0xff]   ;;  %v1711_v53 = vld [vmem:[%s2248_s3 + $0x10] sm:$0xff]   ;;  %s316_s29 = scalar_lea.vmem %s2252_s7, %s1450_s22 }
  0x10   : > { %1565 = vmatprep.subr.bf16.mxu1 %v1686_v6  ;;  %v341_v13 = vld [vmem:[%s310_s30] sm:$0xff]  ;;  %v342_v14 = vld [vmem:[%s310_s30 + $0x8] sm:$0xff]  ;;  %1592 = vmatprep.subr.bf16.mxu0 %v1707_v48  ;;  %v1713_v54 = vld [vmem:[%s2248_s3 + $0x58] sm:$0xff]   ;;  %s323_s24 = scalar_lea.vmem %s2253_s8, %s1558_s20 }
  0x11   : > { %v359_v16 = vpack.c.bf16 %v342_v14, %v341_v13  ;;  %v343_v17 = vrot.slane %v341_v13, 7  ;;  %v344_v18 = vrot.slane %v342_v14, 7  ;;  %v351_v36 = vrot.slane %v341_v13, 1  ;;  %v1715_v55 = vld [vmem:[%s2248_s3 + $0x98] sm:$0xff]   ;;  %v1716_v57 = vld [vmem:[%s2248_s3 + $0x60] sm:$0xff]   ;;  %v1719_v60 = vld [vmem:[%s2248_s3 + $0x68] sm:$0xff]  }
  0x12   : > { %v352_v37 = vrot.slane %v342_v14, 1  ;;  %v1714_v56 = vld [vmem:[%s2248_s3 + $0x18] sm:$0xff]   ;;  %v1718_v58 = vld [vmem:[%s2248_s3 + $0xa0] sm:$0xff]   ;;  %v1720_v61 = vld [vmem:[%s2248_s3 + $0x28] sm:$0xff]  }
  0x13   : > { %1566 = vmatpush3.bf16.msra.mxu1 %v1687_v8  ;;  %591 = vmatprep.mubr.bf16.mxu1 %v359_v16  ;;  %v347_v23 = vsel %vm345_vm1, %v344_v18, %v343_v17  ;;  %v346_v27 = vsel %vm345_vm1, %v343_v17, %v344_v18  ;;  %v1717_v59 = vld [vmem:[%s2248_s3 + $0x20] sm:$0xff]   ;;  %v1721_v62 = vld [vmem:[%s2248_s3 + $0xa8] sm:$0xff]   ;;  %v1722_v63 = vld [vmem:[%s2248_s3 + $0x70] sm:$0xff]  }
  0x14   : > { %1567 = vmatprep.subr.bf16.mxu1 %v1688_v9  ;;  %v348_v26 = vmul.f32 %v1919_v22, %v347_v23  ;;  %v355_v39 = vsel %vm353_vm3, %v352_v37, %v351_v36  ;;  %v354_v43 = vsel %vm353_vm3, %v351_v36, %v352_v37  ;;  %1593 = vmatpush3.bf16.msra.mxu0 %v1708_v50  ;;  %v1723_v0 = vld [vmem:[%s2248_s3 + $0x30] sm:$0xff]   ;;  %v1725_v2 = vld [vmem:[%s2248_s3 + $0x78] sm:$0xff]   ;;  %v1730_v5 = vld [vmem:[%s2250_s5 + $0x4] ss:$8 sps:$4 sm:$0xff]  }
  0x15   : > { %v357_v41 = vmul.f32 %v1966_v40, %v355_v39  ;;  %1594 = vmatprep.subr.bf16.mxu0 %v1710_v51  ;;  %v1724_v1 = vld [vmem:[%s2248_s3 + $0xb0] sm:$0xff]   ;;  %v1726_v3 = vld [vmem:[%s2248_s3 + $0x38] sm:$0xff]   ;;  %v1458_v13 = vld [vmem:[%s2247_s2] ss:$0 sm:$0xff] }
  0x16   : > { %v350_v29 = vpack.c.bf16 %v346_v27, %v348_v26  ;;  %v1727_v4 = vld [vmem:[%s2248_s3 + $0xb8] sm:$0xff]   ;;  %v1728_v36 = vld [vmem:[%s2250_s5] ss:$8 sps:$4 sm:$0xff]   ;;  %v1742_v46 = vld [vmem:[%s2250_s5 + $0x44] ss:$8 sps:$4 sm:$0xff]  }
  0x17   : > { %1568 = vmatpush3.bf16.msra.mxu1 %v1689_v11  ;;  %v358_v44 = vpack.c.bf16 %v357_v41, %v354_v43  ;;  %v1733_v39 = vld [vmem:[%s2250_s5 + $0x14] ss:$8 sps:$4 sm:$0xff]   ;;  %v1731_v41 = vld [vmem:[%s2250_s5 + $0x10] ss:$8 sps:$4 sm:$0xff]   ;;  %v1734_v43 = vld [vmem:[%s2250_s5 + $0x20] ss:$8 sps:$4 sm:$0xff]  }
  0x18   : > { %1569 = vmatprep.subr.bf16.mxu1 %v1690_v12  ;;  %1595 = vmatpush3.bf16.msra.mxu0 %v1711_v53  ;;  %v1737_v45 = vld [vmem:[%s2250_s5 + $0x30] ss:$8 sps:$4 sm:$0xff]   ;;  %v1745_v48 = vld [vmem:[%s2250_s5 + $0x54] ss:$8 sps:$4 sm:$0xff]   ;;  %v1748_v50 = vld [vmem:[%s2250_s5 + $0x64] ss:$8 sps:$4 sm:$0xff]  }
  0x19   : > { %1596 = vmatprep.subr.bf16.mxu0 %v1713_v54  ;;  %v1746_v51 = vld [vmem:[%s2250_s5 + $0x60] ss:$8 sps:$4 sm:$0xff]   ;;  %v1749_v53 = vld [vmem:[%s2250_s5 + $0x70] ss:$8 sps:$4 sm:$0xff]   ;;  %v1754_v54 = vld [vmem:[%s2250_s5 + $0x84] ss:$8 sps:$4 sm:$0xff]  }
  0x1b   : > { %1570 = vmatpush3.bf16.msra.mxu1 %v1691_v15 }
  0x1c   : > { %1571 = vmatprep.subr.bf16.mxu1 %v1692_v19  ;;  %1597 = vmatpush3.bf16.msra.mxu0 %v1714_v56  ;;  %v1757_v56 = vld [vmem:[%s2250_s5 + $0x94] ss:$8 sps:$4 sm:$0xff]  }
  0x1d   : > { %1598 = vmatprep.subr.bf16.mxu0 %v1716_v57  ;;  %v1755_v57 = vld [vmem:[%s2250_s5 + $0x90] ss:$8 sps:$4 sm:$0xff]  }
  0x1f   : > { %1572 = vmatpush3.bf16.msra.mxu1 %v1693_v20 }
  0x20   : > { %1573 = vmatprep.subr.bf16.mxu1 %v1694_v24  ;;  %1599 = vmatpush3.bf16.msra.mxu0 %v1717_v59  ;;  %v1758_v59 = vld [vmem:[%s2250_s5 + $0xa0] ss:$8 sps:$4 sm:$0xff]  }
  0x21   : > { %1600 = vmatprep.subr.bf16.mxu0 %v1719_v60  ;;  %v1763_v60 = vld [vmem:[%s2250_s5 + $0xb4] ss:$8 sps:$4 sm:$0xff]  }
  0x23   : > { %1574 = vmatpush3.bf16.msra.mxu1 %v1695_v25 }
  0x24   : > { %1621 = vmatprep.subr.bf16.mxu1 %v1808_v21  ;;  %1601 = vmatpush3.bf16.msra.mxu0 %v1720_v61  ;;  %v1761_v61 = vld [vmem:[%s2250_s5 + $0xb0] ss:$8 sps:$4 sm:$0xff]  }
  0x25   : > { %1602 = vmatprep.subr.bf16.mxu0 %v1722_v63  ;;  %v1764_v63 = vld [vmem:[%s2250_s5 + $0xc0] ss:$8 sps:$4 sm:$0xff]  }
  0x26   : > { %592 = vmatmul.mubr.bf16.vlgmr.msra.gmra.mrb[0].mxu1 %v350_v29 }
  0x27   : > { %1622 = vmatpush3.bf16.msra.mxu1 %v1696_v28  ;;  %1637 = vmatprep.mubr.msk.bf16.mxu1 %vm1809_vm2, %v1808_v21 }
  0x28   : > { %1623 = vmatprep.subr.bf16.mxu1 %v1808_v21  ;;  %1603 = vmatpush3.bf16.msra.mxu0 %v1723_v0  ;;  %v1769_v0 = vld [vmem:[%s2250_s5 + $0xd4] ss:$8 sps:$4 sm:$0xff]  }
  0x29   : > { %1604 = vmatprep.subr.bf16.mxu0 %v1725_v2  ;;  %v1772_v2 = vld [vmem:[%s2250_s5 + $0xe4] ss:$8 sps:$4 sm:$0xff]  }
  0x2b   : > { %1624 = vmatpush3.bf16.msra.mxu1 %v1697_v30 }
  0x2c   : > { %1625 = vmatprep.subr.bf16.mxu1 %v1808_v21  ;;  %1605 = vmatpush3.bf16.msra.mxu0 %v1726_v3  ;;  %v1770_v3 = vld [vmem:[%s2250_s5 + $0xe0] ss:$8 sps:$4 sm:$0xff]  }
  0x2d   : > { %1258 = vmatprep.subr.bf16.mxu0 %v1730_v5  ;;  %v1775_v5 = vld [vmem:[%s2250_s5 + $0xf4] ss:$8 sps:$4 sm:$0xff]  }
  0x2f   : > { %1626 = vmatpush3.bf16.msra.mxu1 %v1698_v31 }
  0x30   : > { %1627 = vmatprep.subr.bf16.mxu1 %v1808_v21 }
  0x33   : > { %1628 = vmatpush3.bf16.msra.mxu1 %v1699_v32 }
  0x34   : > { %1629 = vmatprep.subr.bf16.mxu1 %v1808_v21 }
  0x37   : > { %1630 = vmatpush3.bf16.msra.mxu1 %v1700_v33 }
  0x38   : > { %1631 = vmatprep.subr.bf16.mxu1 %v1808_v21 }
  0x3b   : > { %1632 = vmatpush3.bf16.msra.mxu1 %v1701_v35 }
  0x3c   : > { %1633 = vmatprep.subr.bf16.mxu1 %v1808_v21 }
  0x3f   : > { %1634 = vmatpush3.bf16.msra.mxu1 %v1702_v38 }
  0x40   : > { %1635 = vmatprep.subr.bf16.mxu1 %v1808_v21 }
  0x43   : > { %1636 = vmatpush3.bf16.msra.mxu1 %v1703_v42  ;;  %v1736_v42 = vld [vmem:[%s2250_s5 + $0x24] ss:$8 sps:$4 sm:$0xff]  }
  0x44   : > { %1641 = vmatprep.subr.bf16.mxu1 %v1808_v21 }
  0x46   : > { %1638 = vmatmul.mubr.bf16.vlgmr.msra.gmra.mrb[4].mxu1 %v358_v44  ;;  %v1739_v44 = vld [vmem:[%s2250_s5 + $0x34] ss:$8 sps:$4 sm:$0xff]  }
  0x47   : > { %1657 = vmatprep.mubr.msk.bf16.mxu1 %vm1809_vm2, %v1808_v21  ;;  %1642 = vmatpush3.bf16.msra.mxu1 %v1706_v47  ;;  %v1740_v47 = vld [vmem:[%s2250_s5 + $0x40] ss:$8 sps:$4 sm:$0xff]  }
  0x48   : > { %1643 = vmatprep.subr.bf16.mxu1 %v1808_v21 }
  0x4b   : > { %1644 = vmatpush3.bf16.msra.mxu1 %v1709_v49  ;;  %v1743_v49 = vld [vmem:[%s2250_s5 + $0x50] ss:$8 sps:$4 sm:$0xff]  }
  0x4c   : > { %1645 = vmatprep.subr.bf16.mxu1 %v1808_v21 }
  0x4f   : > { %1646 = vmatpush3.bf16.msra.mxu1 %v1712_v52  ;;  %v1751_v52 = vld [vmem:[%s2250_s5 + $0x74] ss:$8 sps:$4 sm:$0xff]  }
  0x50   : > { %1647 = vmatprep.subr.bf16.mxu1 %v1808_v21 }
  0x53   : > { %1648 = vmatpush3.bf16.msra.mxu1 %v1715_v55  ;;  %v1752_v55 = vld [vmem:[%s2250_s5 + $0x80] ss:$8 sps:$4 sm:$0xff]  }
  0x54   : > { %1649 = vmatprep.subr.bf16.mxu1 %v1808_v21 }
  0x57   : > { %1650 = vmatpush3.bf16.msra.mxu1 %v1718_v58  ;;  %v1760_v58 = vld [vmem:[%s2250_s5 + $0xa4] ss:$8 sps:$4 sm:$0xff]  }
  0x58   : > { %1651 = vmatprep.subr.bf16.mxu1 %v1808_v21 }
  0x5b   : > { %1652 = vmatpush3.bf16.msra.mxu1 %v1721_v62  ;;  %v1766_v62 = vld [vmem:[%s2250_s5 + $0xc4] ss:$8 sps:$4 sm:$0xff]  }
  0x5c   : > { %1653 = vmatprep.subr.bf16.mxu1 %v1808_v21 }
  0x5f   : > { %1654 = vmatpush3.bf16.msra.mxu1 %v1724_v1  ;;  %v1767_v1 = vld [vmem:[%s2250_s5 + $0xd0] ss:$8 sps:$4 sm:$0xff]  }
  0x60   : > { %1655 = vmatprep.subr.bf16.mxu1 %v1808_v21 }
  0x63   : > { %1656 = vmatpush3.bf16.msra.mxu1 %v1727_v4  ;;  %v1773_v4 = vld [vmem:[%s2250_s5 + $0xf0] ss:$8 sps:$4 sm:$0xff]  }
  0xf9   : > { %v1575_v6 = vpop.f32.mrb[0].mxu1 }
  0xfa   : > { %v1576_v7 = vpop.f32.mrb[1].mxu1 }
  0xfb   : > { %v1577_v8 = vadd.f32 %v1576_v7, %v1575_v6  ;;  %v1578_v9 = vpop.f32.mrb[2].mxu1  ;;  %v1778_v6 = vld [vmem:[%s2250_s5 + $0x104] ss:$8 sps:$4 sm:$0xff]  }
  0xfc   : > { %v1579_v11 = vpop.f32.mrb[3].mxu1 }
  0xfd   : > { %v1580_v12 = vadd.f32 %v1579_v11, %v1578_v9  ;;  %v594_v14 = vadd.f32 %v1577_v8, %v1458_v13  ;;  %v1483_v9 = vld [vmem:[%s2249_s4] ss:$0 sm:$0xff] }
  0xff   : > { %v597_v18 = vadd.f32 %v1580_v12, %v1458_v13 }
 0x119   : > { %v634_v15 = vpop.f32.mrb[4].mxu1 }
 0x11a   : > { %v635_v16 = vadd.f32 %v634_v15, %v594_v14  ;;  %v1639_v17 = vpop.f32.mrb[5].mxu1 }
 0x11b   : > { %v637_v19 = vpop.f32.mrb[6].mxu1 }
 0x11c   : > { %v641_v20 = vmax.f32 %v635_v16, 0.0  ;;  %v638_v21 = vadd.f32 %v637_v19, %v597_v18  ;;  %v1640_v23 = vpop.f32.mrb[7].mxu1 }
 0x11e   : > { %v642_v24 = vmax.f32 %v638_v21, 0.0  ;;  %v643_v25 = vrot.slane %v641_v20, 7  ;;  %v650_v26 = vrot.slane %v641_v20, 1 }
 0x120   : > { %v644_v27 = vrot.slane %v642_v24, 7  ;;  %v651_v28 = vrot.slane %v642_v24, 1  ;;  %v657_v29 = vpack.c.bf16 %v642_v24, %v641_v20 }
 0x122   : > { %v653_v30 = vsel %vm353_vm3, %v651_v28, %v650_v26  ;;  %889 = vmatprep.mubr.bf16.mxu0 %v657_v29  ;;  %v645_v31 = vsel %vm345_vm1, %v643_v25, %v644_v27  ;;  %v646_v32 = vsel %vm345_vm1, %v644_v27, %v643_v25  ;;  %v652_v33 = vsel %vm353_vm3, %v650_v26, %v651_v28 }
 0x123   : > { %v647_v34 = vmul.f32 %v1919_v22, %v646_v32  ;;  %v655_v35 = vmul.f32 %v1966_v40, %v653_v30 }
 0x125   : > { %v649_v37 = vpack.c.bf16 %v645_v31, %v647_v34  ;;  %v656_v38 = vpack.c.bf16 %v655_v35, %v652_v33 }
 0x127   : > { %890 = vmatmul.mubr.bf16.vlgmr.msra.gmra.mrb[0].mxu0 %v649_v37  ;;  %1658 = vmatmul.mubr.bf16.vlgmr.msra.gmra.mrb[8].mxu1 %v656_v38  ;;  %v1776_v37 = vld [vmem:[%s2250_s5 + $0x100] ss:$8 sps:$4 sm:$0xff]  }
 0x128   : > { %1259 = vmatpush1.bf16.msra.mxu0 %v1728_v36 }
 0x129   : > { %1260 = vmatprep.subr.bf16.mxu0 %v1733_v39  ;;  %v1781_v39 = vld [vmem:[%s2250_s5 + $0x114] ss:$8 sps:$4 sm:$0xff]  }
 0x12c   : > { %1261 = vmatpush1.bf16.msra.mxu0 %v1731_v41 }
 0x12d   : > { %1262 = vmatprep.subr.bf16.mxu0 %v1736_v42  ;;  %v1779_v42 = vld [vmem:[%s2250_s5 + $0x110] ss:$8 sps:$4 sm:$0xff]  }
 0x130   : > { %1263 = vmatpush1.bf16.msra.mxu0 %v1734_v43  ;;  %v1810_v43 = vmov 0  }
 0x131   : > { %1264 = vmatprep.subr.bf16.mxu0 %v1739_v44  ;;  %v1787_v44 = vld [vmem:[%s2250_s5 + $0x134] ss:$8 sps:$4 sm:$0xff]  }
 0x134   : > { %1265 = vmatpush1.bf16.msra.mxu0 %v1737_v45  ;;  %v1785_v45 = vld [vmem:[%s2250_s5 + $0x130] ss:$8 sps:$4 sm:$0xff]  }
 0x135   : > { %1266 = vmatprep.subr.bf16.mxu0 %v1742_v46  ;;  %v1790_v46 = vld [vmem:[%s2250_s5 + $0x144] ss:$8 sps:$4 sm:$0xff]  }
 0x138   : > { %1267 = vmatpush1.bf16.msra.mxu0 %v1740_v47  ;;  %v1788_v47 = vld [vmem:[%s2250_s5 + $0x140] ss:$8 sps:$4 sm:$0xff]  }
 0x139   : > { %1268 = vmatprep.subr.bf16.mxu0 %v1745_v48  ;;  %v1793_v48 = vld [vmem:[%s2250_s5 + $0x154] ss:$8 sps:$4 sm:$0xff]  }
 0x13c   : > { %1269 = vmatpush1.bf16.msra.mxu0 %v1743_v49  ;;  %v1791_v49 = vld [vmem:[%s2250_s5 + $0x150] ss:$8 sps:$4 sm:$0xff]  }
 0x13d   : > { %1270 = vmatprep.subr.bf16.mxu0 %v1748_v50  ;;  %v1796_v50 = vld [vmem:[%s2250_s5 + $0x164] ss:$8 sps:$4 sm:$0xff]  }
 0x140   : > { %1271 = vmatpush1.bf16.msra.mxu0 %v1746_v51  ;;  %v1794_v51 = vld [vmem:[%s2250_s5 + $0x160] ss:$8 sps:$4 sm:$0xff]  }
 0x141   : > { %1272 = vmatprep.subr.bf16.mxu0 %v1751_v52  ;;  %v1799_v52 = vld [vmem:[%s2250_s5 + $0x174] ss:$8 sps:$4 sm:$0xff]  }
 0x144   : > { %1273 = vmatpush1.bf16.msra.mxu0 %v1749_v53  ;;  %v1797_v53 = vld [vmem:[%s2250_s5 + $0x170] ss:$8 sps:$4 sm:$0xff]  }
 0x145   : > { %1274 = vmatprep.subr.bf16.mxu0 %v1754_v54  ;;  %v1010_v54 = vsub.s32 0, %v1899_v10 }
 0x148   : > { %1275 = vmatpush1.bf16.msra.mxu0 %v1752_v55  ;;  %v1006_v55 = vld [vmem:[%s2251_s6] sm:$0x3] }
 0x149   : > { %1276 = vmatprep.subr.bf16.mxu0 %v1757_v56  ;;  %v1014_v56 = vsub.s32 1, %v1899_v10 }
 0x14c   : > { %1277 = vmatpush1.bf16.msra.mxu0 %v1755_v57  ;;  %v1011_v57 = vrot.slane %v1006_v55, %v1010_v54 }
 0x14d   : > { %1278 = vmatprep.subr.bf16.mxu0 %v1760_v58  ;;  %v1015_v58 = vrot.slane %v1006_v55, %v1014_v56 }
 0x150   : > { %1279 = vmatpush1.bf16.msra.mxu0 %v1758_v59 }
 0x151   : > { %1280 = vmatprep.subr.bf16.mxu0 %v1763_v60 }
 0x154   : > { %1281 = vmatpush1.bf16.msra.mxu0 %v1761_v61 }
 0x155   : > { %1282 = vmatprep.subr.bf16.mxu0 %v1766_v62 }
 0x158   : > { %1283 = vmatpush1.bf16.msra.mxu0 %v1764_v63 }
 0x159   : > { %1284 = vmatprep.subr.bf16.mxu0 %v1769_v0 }
 0x15c   : > { %1285 = vmatpush1.bf16.msra.mxu0 %v1767_v1 }
 0x15d   : > { %1286 = vmatprep.subr.bf16.mxu0 %v1772_v2 }
 0x160   : > { %1287 = vmatpush1.bf16.msra.mxu0 %v1770_v3 }
 0x161   : > { %1288 = vmatprep.subr.bf16.mxu0 %v1775_v5 }
 0x164   : > { %1289 = vmatpush1.bf16.msra.mxu0 %v1773_v4 }
 0x165   : > { %1301 = vmatprep.subr.bf16.mxu0 %v1778_v6 }
 0x1fa   : > { %v1606_v7 = vpop.f32.mrb[0].mxu0  ;;  %v932_v8 = vpop.f32.mrb[8].mxu1 }
 0x1fb   : > { %v1607_v11 = vpop.f32.mrb[1].mxu0  ;;  %v1659_v12 = vpop.f32.mrb[9].mxu1 }
 0x1fc   : > { %v1608_v13 = vadd.f32 %v1607_v11, %v1606_v7  ;;  %v1609_v14 = vpop.f32.mrb[2].mxu0  ;;  %v935_v15 = vpop.f32.mrb[10].mxu1 }
 0x1fd   : > { %v1610_v16 = vpop.f32.mrb[3].mxu0  ;;  %v1660_v17 = vpop.f32.mrb[11].mxu1 }
 0x1fe   : > { %v892_v18 = vadd.f32 %v1608_v13, %v1483_v9  ;;  %v1611_v19 = vadd.f32 %v1610_v16, %v1609_v14 }
 0x200   : > { %v933_v20 = vadd.f32 %v932_v8, %v892_v18  ;;  %v895_v21 = vadd.f32 %v1611_v19, %v1483_v9 }
 0x202   : > { %v939_v23 = vmax.f32 %v933_v20, 0.0  ;;  %v936_v24 = vadd.f32 %v935_v15, %v895_v21 }
 0x204   : > { %941 = vst [vmem:[%s316_s29] sm:$0xff] %v939_v23  ;;  %v940_v25 = vmax.f32 %v936_v24, 0.0  ;;  %v943_v26 = vrot.slane %v939_v23, 7  ;;  %v950_v29 = vrot.slane %v939_v23, 1 }
 0x206   : > { %942 = vst [vmem:[%s316_s29 + $0x8] sm:$0xff] %v940_v25  ;;  %v957_v27 = vpack.c.bf16 %v940_v25, %v939_v23  ;;  %v944_v28 = vrot.slane %v940_v25, 7  ;;  %v951_v30 = vrot.slane %v940_v25, 1 }
 0x208   : > { %1290 = vmatprep.mubr.bf16.mxu0 %v957_v27  ;;  %v945_v31 = vsel %vm345_vm1, %v943_v26, %v944_v28  ;;  %v946_v32 = vsel %vm345_vm1, %v944_v28, %v943_v26  ;;  %v952_v33 = vsel %vm353_vm3, %v950_v29, %v951_v30  ;;  %v953_v34 = vsel %vm353_vm3, %v951_v30, %v950_v29 }
 0x209   : > { %v947_v35 = vmul.f32 %v1919_v22, %v946_v32  ;;  %v955_v36 = vmul.f32 %v1966_v40, %v953_v34  ;;  %v1784_v22 = vld [vmem:[%s2250_s5 + $0x124] ss:$8 sps:$4 sm:$0xff]   ;;  %v1782_v40 = vld [vmem:[%s2250_s5 + $0x120] ss:$8 sps:$4 sm:$0xff]  }
 0x20b   : > { %v949_v38 = vpack.c.bf16 %v945_v31, %v947_v35  ;;  %v956_v41 = vpack.c.bf16 %v955_v36, %v952_v33 }
 0x20d   : > { %1291 = vmatmul.mubr.bf16.vlgmr.msra.gmra.mrb[4].mxu0 %v949_v38 }
 0x20e   : > { %1302 = vmatpush1.bf16.msra.mxu0 %v1776_v37  ;;  %1333 = vmatprep.mubr.bf16.mxu0 %v1810_v43 }
 0x20f   : > { %1303 = vmatprep.subr.bf16.mxu0 %v1781_v39 }
 0x212   : > { %1304 = vmatpush1.bf16.msra.mxu0 %v1779_v42 }
 0x213   : > { %1305 = vmatprep.subr.bf16.mxu0 %v1784_v22 }
 0x216   : > { %1306 = vmatpush1.bf16.msra.mxu0 %v1782_v40 }
 0x217   : > { %1307 = vmatprep.subr.bf16.mxu0 %v1787_v44 }
 0x21a   : > { %1308 = vmatpush1.bf16.msra.mxu0 %v1785_v45 }
 0x21b   : > { %1309 = vmatprep.subr.bf16.mxu0 %v1790_v46 }
 0x21e   : > { %1310 = vmatpush1.bf16.msra.mxu0 %v1788_v47 }
 0x21f   : > { %1311 = vmatprep.subr.bf16.mxu0 %v1793_v48 }
 0x222   : > { %1312 = vmatpush1.bf16.msra.mxu0 %v1791_v49 }
 0x223   : > { %1313 = vmatprep.subr.bf16.mxu0 %v1796_v50 }
 0x226   : > { %1314 = vmatpush1.bf16.msra.mxu0 %v1794_v51 }
 0x227   : > { %1315 = vmatprep.subr.bf16.mxu0 %v1799_v52 }
 0x22a   : > { %1316 = vmatpush1.bf16.msra.mxu0 %v1797_v53 }
 0x22d   : > { %1334 = vmatmul.mubr.bf16.vlgmr.msra.gmra.mrb[4].mxu0 %v956_v41 }
 0x300   : > { %v1335_v59 = vpop.f32.mrb[4].mxu0 }
 0x301   : > { %v1661_v60 = vadd.f32 %v1335_v59, %v1011_v57  ;;  %v1337_v61 = vpop.f32.mrb[5].mxu0 }
 0x302   : > { %v1662_v62 = vadd.f32 %v1337_v61, %v1015_v58  ;;  %v1339_v63 = vpop.f32.mrb[6].mxu0 }
 0x303   : > { %v1344_v0 = vmax.f32 %v1661_v60, 0.0  ;;  %v1663_v1 = vadd.f32 %v1339_v63, %v1011_v57  ;;  %v1341_v2 = vpop.f32.mrb[7].mxu0 }
 0x304   : > { %v1345_v3 = vmax.f32 %v1662_v62, 0.0  ;;  %v1664_v4 = vadd.f32 %v1341_v2, %v1015_v58 }
 0x305   : > { %1348 = vst [vmem:[%s323_s24] sm:$0xff] %v1344_v0  ;;  %v1346_v5 = vmax.f32 %v1663_v1, 0.0 }
 0x306   : > { %1349 = vst [vmem:[%s323_s24 + $0x8] sm:$0xff] %v1345_v3  ;;  %v1347_v10 = vmax.f32 %v1664_v4, 0.0 }
 0x307   : > { %1350 = vst [vmem:[%s323_s24 + $0x10] sm:$0xff] %v1346_v5 }
 0x308   : > { %1351 = vst [vmem:[%s323_s24 + $0x18] sm:$0xff] %v1347_v10 }
 0x309 PF: > { %s19_s27 = sadd.s32 1, %s1806_s27  }
 0x30a   : > { %p16_p4 = scmp.ge.s32.totalorder %s19_s27, 4  }
 0x30c   :  { %18 = sbr.rel (!%p16_p4) target bundleno = 1 (0x1), region = 90 }

</bundles_post_ra>
